<compile_context>
chip_gen: v7x
topology: tpu7x:2x2x1
jax: 0.10.0
libtpu: 0.0.40
codegen_flags: <defaults>
</compile_context>

<pallas_src>
import functools

import jax
import jax.numpy as jnp
from jax.experimental import pallas as pl
from jax.experimental.pallas import tpu as pltpu

_LANE = 128  # TPU lane width


def mlp_mish_kernel(x_ref, w1_ref, b1_ref, w2_ref, b2_ref, o_ref):
    """Fused Linear -> Mish -> Linear on one sublane-packed batch tile.

    x_ref : (F*8, TB) VMEM  row 8*f+s = feature f of batch b = s*cols + lane
    w1_ref: (H, F)   SMEM   b1_ref: (H,) SMEM
    w2_ref: (O, H)   SMEM   b2_ref: (O,) SMEM
    o_ref : (O*8, TB) VMEM  row 8*k+s = output k of batch b = s*cols + lane
    """
    F = w1_ref.shape[1]
    H = b1_ref.shape[0]
    O = b2_ref.shape[0]

    # ---- Linear 1 on the VPU: unrolled broadcast-multiply-adds over dense
    # (8, TB) per-feature slabs; weights/biases are SMEM scalars.
    hs = [None] * H
    for f in range(F):
        xf = x_ref[pl.ds(8 * f, 8), :].astype(jnp.float32)  # (8, TB) dense slab
        for j in range(H):
            contrib = w1_ref[j, f] * xf
            hs[j] = contrib if hs[j] is None else hs[j] + contrib
    hs = [hs[j] + b1_ref[j] for j in range(H)]

    # ---- Mish: h * tanh(softplus(h)) == h * (u^2 - 1)/(u^2 + 1), u = 1 + e^h.
    # exp is clamped at 20 so u^2 stays finite; beyond the clamp the rational
    # term is already 1.0 in f32, so no extra select is needed.
    # (approx reciprocal -> ~2^-12 relative error on the tanh term.)
    ms = []
    for j in range(H):
        h = hs[j]
        u = 1.0 + jnp.exp(jnp.minimum(h, 20.0))
        u2 = u * u
        ms.append(h * ((u2 - 1.0) * pl.reciprocal(u2 + 1.0, approx=True)))

    # ---- Linear 2 on the VPU, one dense (O*8, TB) lane-dense store.
    outs = []
    for k in range(O):
        acc = w2_ref[k, 0] * ms[0]
        for j in range(1, H):
            acc = acc + w2_ref[k, j] * ms[j]
        outs.append(acc + b2_ref[k])
    out = outs[0] if O == 1 else jnp.concatenate(outs, axis=0)
    o_ref[...] = out.astype(o_ref.dtype)


def linear_regression_model_forward(x, w1, b1, w2, b2, *, tb=16384):
    """Forward pass of LinearRegressionModel.

    x : (B, input_features) float32
    w1: (input_features, hidden)   b1: (hidden,)
    w2: (hidden, output_features)  b2: (output_features,)
    returns (B, output_features)

    `tb` is the batch tile in lane columns (each column carries 8 batch
    elements on sublanes, i.e. 8*tb batch elements per grid step).  Keep the
    double-buffered footprint ~2*(F*8 + O*8)*tb*4 B comfortably under the
    scoped VMEM limit (32 MiB here; v7x physical VMEM is 64 MiB).
    Wrap this function in jax.jit so the pack/unpack reshapes fuse.
    """
    B, F = x.shape
    H = w1.shape[1]
    O = w2.shape[1]

    # ---- choose lane-aligned column tile & padded batch ---------------------
    # batch folds x8 onto sublanes: minimal lane-aligned column count.
    cols_min = pl.cdiv(B, 8 * _LANE) * _LANE
    tb = max(_LANE, (tb // _LANE) * _LANE)
    # Ensure >=2 grid steps when the batch allows it so the "parallel" axis can
    # be sharded across v7x's two TensorCores.
    if cols_min >= 2 * _LANE:
        tb = min(tb, max(_LANE, (cols_min // (2 * _LANE)) * _LANE))
    tb = min(tb, cols_min)
    cols = pl.cdiv(cols_min, tb) * tb
    b_pad = 8 * cols
    grid = cols // tb

    # ---- pack x: (B, F) -> (F*8, cols); batch on lanes, x8 fold on sublanes.
    # Row 8*f + s holds feature f of batch elements b = s*cols + c (lane c).
    # Under jit, pad+reshape+transpose compiles to a single fused HBM copy.
    x_pad = jnp.pad(x, ((0, b_pad - B), (0, 0)))
    xp = x_pad.reshape(8, cols, F).transpose(2, 0, 1).reshape(F * 8, cols)

    w1t = w1.T  # (H, F)  -> SMEM
    w2t = w2.T  # (O, H)  -> SMEM

    cost = pl.CostEstimate(
        flops=2 * B * (F * H + H * O) + 6 * B * H,
        transcendentals=2 * B * H,
        bytes_accessed=4 * (B * F + B * O + F * H + H * O + H + O),
    )

    out_p = pl.pallas_call(
        mlp_mish_kernel,
        out_shape=jax.ShapeDtypeStruct((O * 8, cols), x.dtype),
        grid=(grid,),
        in_specs=[
            # x streamed in dense (F*8, tb) tiles, double-buffered by Pallas.
            # (If a profile shows exposed DMA on v7x, add
            #  pipeline_mode=pl.Buffered(3) here.)
            pl.BlockSpec((F * 8, tb), lambda i: (0, i)),
            # Tiny weights/biases live in SMEM (scalar reads, no per-step DMA).
            pl.BlockSpec(memory_space=pltpu.MemorySpace.SMEM),
            pl.BlockSpec(memory_space=pltpu.MemorySpace.SMEM),
            pl.BlockSpec(memory_space=pltpu.MemorySpace.SMEM),
            pl.BlockSpec(memory_space=pltpu.MemorySpace.SMEM),
        ],
        out_specs=pl.BlockSpec((O * 8, tb), lambda i: (0, i)),
        compiler_params=pltpu.CompilerParams(
            # Batch tiles are independent -> shard across v7x's TensorCores.
            dimension_semantics=("parallel",),
            # Raise v5e's 16 MiB scoped default; no-op on v6e/v7x, and well
            # inside v7x's 64 MiB physical VMEM.
            vmem_limit_bytes=32 * 1024 * 1024,
        ),
        cost_estimate=cost,
    )(xp, w1t, b1, w2t, b2)

    # ---- unpack: (O*8, cols) -> (b_pad, O) -> (B, O) ------------------------
    out = out_p.reshape(O, 8, cols).transpose(1, 2, 0).reshape(b_pad, O)
    return out[:B]


def init_params(key, input_features, output_features, hidden_units=2):
    """Mimic torch.nn.Linear default init U(-1/sqrt(fan_in), 1/sqrt(fan_in))."""
    k1, k2, k3, k4 = jax.random.split(key, 4)
    bound1 = 1.0 / jnp.sqrt(jnp.float32(input_features))
    bound2 = 1.0 / jnp.sqrt(jnp.float32(hidden_units))
    # Stored as (in, out) so forward computes x @ W + b (== torch x @ W.T + b).
    w1 = jax.random.uniform(k1, (input_features, hidden_units), jnp.float32, -bound1, bound1)
    b1 = jax.random.uniform(k2, (hidden_units,), jnp.float32, -bound1, bound1)
    w2 = jax.random.uniform(k3, (hidden_units, output_features), jnp.float32, -bound2, bound2)
    b2 = jax.random.uniform(k4, (output_features,), jnp.float32, -bound2, bound2)
    return w1, b1, w2, b2


if __name__ == "__main__":
    key = jax.random.PRNGKey(0)
    kx, kp = jax.random.split(key)

    batch = 2000          # not a multiple of 8*128: exercises batch padding
    input_features = 4
    hidden_units = 2
    output_features = 1

    x = jax.random.normal(kx, (batch, input_features), jnp.float32)
    w1, b1, w2, b2 = init_params(kp, input_features, output_features, hidden_units)

    fwd = jax.jit(
        functools.partial(linear_regression_model_forward),
        static_argnames=("tb",),
    )
    # tb=128 -> 2 grid steps at this small demo batch (exercises the pipeline
    # and the parallel grid axis); large batches should use the default tb.
    out = fwd(x, w1, b1, w2, b2, tb=128)
    out = jax.block_until_ready(out)

    # Reference in plain JAX: Mish(h) = h * tanh(softplus(h)).
    h_ref = x @ w1 + b1
    m_ref = h_ref * jnp.tanh(jax.nn.softplus(h_ref))
    ref = m_ref @ w2 + b2

    assert out.shape == (batch, output_features)
    max_err = float(jnp.max(jnp.abs(out - ref)))
    # approx reciprocal in the Mish rational form -> ~1e-4-level error at these
    # activation magnitudes.
    assert jnp.allclose(out, ref, atol=5e-3, rtol=5e-3), f"max abs err {max_err}"

    # TODO(synk): fit() (AdamW training loop / MSELoss) is host-side training code,
    # intentionally not ported to a kernel.
    print("KERNEL_OK")
</pallas_src>

<mosaic_0001>
module attributes {stable_mosaic.version = 11 : i64} {
  func.func @mlp_mish_kernel(%arg0: i32, %arg1: memref<32x128xf32, #tpu.memory_space<vmem>>, %arg2: memref<2x4xf32, #tpu.memory_space<smem>>, %arg3: memref<2xf32, #tpu.memory_space<smem>>, %arg4: memref<1x2xf32, #tpu.memory_space<smem>>, %arg5: memref<1xf32, #tpu.memory_space<smem>>, %arg6: memref<8x128xf32, #tpu.memory_space<vmem>>) attributes {dimension_semantics = [#tpu.dimension_semantics<parallel>], iteration_bounds = array<i64: 2>, scalar_prefetch = 0 : i64, scratch_operands = 0 : i64, tpu.core_type = #tpu.core_type<tc>, window_params = [{transform_indices = @transform_0, window_bounds = array<i64: 32, 128>}, {transform_indices = @transform_1, window_bounds = array<i64: 2, 4>}, {transform_indices = @transform_2, window_bounds = array<i64: 2>}, {transform_indices = @transform_3, window_bounds = array<i64: 1, 2>}, {transform_indices = @transform_4, window_bounds = array<i64: 1>}, {transform_indices = @transform_5, window_bounds = array<i64: 8, 128>}]} {
    %c0 = arith.constant 0 : index
    %c0_0 = arith.constant 0 : index
    %0 = vector.load %arg1[%c0, %c0_0] : memref<32x128xf32, #tpu.memory_space<vmem>>, vector<8x128xf32>
    %c0_1 = arith.constant 0 : index
    %c0_2 = arith.constant 0 : index
    %1 = memref.load %arg2[%c0_1, %c0_2] : memref<2x4xf32, #tpu.memory_space<smem>>
    %2 = vector.broadcast %1 : f32 to vector<8x128xf32>
    %3 = arith.mulf %2, %0 : vector<8x128xf32>
    %c1 = arith.constant 1 : index
    %c0_3 = arith.constant 0 : index
    %4 = memref.load %arg2[%c1, %c0_3] : memref<2x4xf32, #tpu.memory_space<smem>>
    %5 = vector.broadcast %4 : f32 to vector<8x128xf32>
    %6 = arith.mulf %5, %0 : vector<8x128xf32>
    %c8 = arith.constant 8 : index
    %c0_4 = arith.constant 0 : index
    %7 = vector.load %arg1[%c8, %c0_4] : memref<32x128xf32, #tpu.memory_space<vmem>>, vector<8x128xf32>
    %c0_5 = arith.constant 0 : index
    %c1_6 = arith.constant 1 : index
    %8 = memref.load %arg2[%c0_5, %c1_6] : memref<2x4xf32, #tpu.memory_space<smem>>
    %9 = vector.broadcast %8 : f32 to vector<8x128xf32>
    %10 = arith.mulf %9, %7 : vector<8x128xf32>
    %11 = arith.addf %3, %10 : vector<8x128xf32>
    %c1_7 = arith.constant 1 : index
    %c1_8 = arith.constant 1 : index
    %12 = memref.load %arg2[%c1_7, %c1_8] : memref<2x4xf32, #tpu.memory_space<smem>>
    %13 = vector.broadcast %12 : f32 to vector<8x128xf32>
    %14 = arith.mulf %13, %7 : vector<8x128xf32>
    %15 = arith.addf %6, %14 : vector<8x128xf32>
    %c16 = arith.constant 16 : index
    %c0_9 = arith.constant 0 : index
    %16 = vector.load %arg1[%c16, %c0_9] : memref<32x128xf32, #tpu.memory_space<vmem>>, vector<8x128xf32>
    %c0_10 = arith.constant 0 : index
    %c2 = arith.constant 2 : index
    %17 = memref.load %arg2[%c0_10, %c2] : memref<2x4xf32, #tpu.memory_space<smem>>
    %18 = vector.broadcast %17 : f32 to vector<8x128xf32>
    %19 = arith.mulf %18, %16 : vector<8x128xf32>
    %20 = arith.addf %11, %19 : vector<8x128xf32>
    %c1_11 = arith.constant 1 : index
    %c2_12 = arith.constant 2 : index
    %21 = memref.load %arg2[%c1_11, %c2_12] : memref<2x4xf32, #tpu.memory_space<smem>>
    %22 = vector.broadcast %21 : f32 to vector<8x128xf32>
    %23 = arith.mulf %22, %16 : vector<8x128xf32>
    %24 = arith.addf %15, %23 : vector<8x128xf32>
    %c24 = arith.constant 24 : index
    %c0_13 = arith.constant 0 : index
    %25 = vector.load %arg1[%c24, %c0_13] : memref<32x128xf32, #tpu.memory_space<vmem>>, vector<8x128xf32>
    %c0_14 = arith.constant 0 : index
    %c3 = arith.constant 3 : index
    %26 = memref.load %arg2[%c0_14, %c3] : memref<2x4xf32, #tpu.memory_space<smem>>
    %27 = vector.broadcast %26 : f32 to vector<8x128xf32>
    %28 = arith.mulf %27, %25 : vector<8x128xf32>
    %29 = arith.addf %20, %28 : vector<8x128xf32>
    %c1_15 = arith.constant 1 : index
    %c3_16 = arith.constant 3 : index
    %30 = memref.load %arg2[%c1_15, %c3_16] : memref<2x4xf32, #tpu.memory_space<smem>>
    %31 = vector.broadcast %30 : f32 to vector<8x128xf32>
    %32 = arith.mulf %31, %25 : vector<8x128xf32>
    %33 = arith.addf %24, %32 : vector<8x128xf32>
    %c0_17 = arith.constant 0 : index
    %34 = memref.load %arg3[%c0_17] : memref<2xf32, #tpu.memory_space<smem>>
    %35 = vector.broadcast %34 : f32 to vector<8x128xf32>
    %36 = arith.addf %29, %35 : vector<8x128xf32>
    %c1_18 = arith.constant 1 : index
    %37 = memref.load %arg3[%c1_18] : memref<2xf32, #tpu.memory_space<smem>>
    %38 = vector.broadcast %37 : f32 to vector<8x128xf32>
    %39 = arith.addf %33, %38 : vector<8x128xf32>
    %cst = arith.constant 2.000000e+01 : f32
    %40 = vector.broadcast %cst : f32 to vector<8x128xf32>
    %41 = arith.minimumf %36, %40 : vector<8x128xf32>
    %42 = math.exp %41 : vector<8x128xf32>
    %cst_19 = arith.constant 1.000000e+00 : f32
    %43 = vector.broadcast %cst_19 : f32 to vector<8x128xf32>
    %44 = arith.addf %43, %42 : vector<8x128xf32>
    %45 = arith.mulf %44, %44 : vector<8x128xf32>
    %cst_20 = arith.constant 1.000000e+00 : f32
    %46 = vector.broadcast %cst_20 : f32 to vector<8x128xf32>
    %47 = arith.subf %45, %46 : vector<8x128xf32>
    %cst_21 = arith.constant 1.000000e+00 : f32
    %48 = vector.broadcast %cst_21 : f32 to vector<8x128xf32>
    %49 = arith.addf %45, %48 : vector<8x128xf32>
    %50 = tpu.reciprocal %49 {approx = true} : vector<8x128xf32> -> vector<8x128xf32>
    %51 = arith.mulf %47, %50 : vector<8x128xf32>
    %52 = arith.mulf %36, %51 : vector<8x128xf32>
    %cst_22 = arith.constant 2.000000e+01 : f32
    %53 = vector.broadcast %cst_22 : f32 to vector<8x128xf32>
    %54 = arith.minimumf %39, %53 : vector<8x128xf32>
    %55 = math.exp %54 : vector<8x128xf32>
    %cst_23 = arith.constant 1.000000e+00 : f32
    %56 = vector.broadcast %cst_23 : f32 to vector<8x128xf32>
    %57 = arith.addf %56, %55 : vector<8x128xf32>
    %58 = arith.mulf %57, %57 : vector<8x128xf32>
    %cst_24 = arith.constant 1.000000e+00 : f32
    %59 = vector.broadcast %cst_24 : f32 to vector<8x128xf32>
    %60 = arith.subf %58, %59 : vector<8x128xf32>
    %cst_25 = arith.constant 1.000000e+00 : f32
    %61 = vector.broadcast %cst_25 : f32 to vector<8x128xf32>
    %62 = arith.addf %58, %61 : vector<8x128xf32>
    %63 = tpu.reciprocal %62 {approx = true} : vector<8x128xf32> -> vector<8x128xf32>
    %64 = arith.mulf %60, %63 : vector<8x128xf32>
    %65 = arith.mulf %39, %64 : vector<8x128xf32>
    %c0_26 = arith.constant 0 : index
    %c0_27 = arith.constant 0 : index
    %66 = memref.load %arg4[%c0_26, %c0_27] : memref<1x2xf32, #tpu.memory_space<smem>>
    %67 = vector.broadcast %66 : f32 to vector<8x128xf32>
    %68 = arith.mulf %67, %52 : vector<8x128xf32>
    %c0_28 = arith.constant 0 : index
    %c1_29 = arith.constant 1 : index
    %69 = memref.load %arg4[%c0_28, %c1_29] : memref<1x2xf32, #tpu.memory_space<smem>>
    %70 = vector.broadcast %69 : f32 to vector<8x128xf32>
    %71 = arith.mulf %70, %65 : vector<8x128xf32>
    %72 = arith.addf %68, %71 : vector<8x128xf32>
    %c0_30 = arith.constant 0 : index
    %73 = memref.load %arg5[%c0_30] : memref<1xf32, #tpu.memory_space<smem>>
    %74 = vector.broadcast %73 : f32 to vector<8x128xf32>
    %75 = arith.addf %72, %74 : vector<8x128xf32>
    %c0_31 = arith.constant 0 : index
    %c0_32 = arith.constant 0 : index
    %76 = vector.load %arg6[%c0_31, %c0_32] : memref<8x128xf32, #tpu.memory_space<vmem>>, vector<8x128xf32>
    tpu.vector_store %arg6[%c0_31, %c0_32], %75 {strides = array<i32>} : memref<8x128xf32, #tpu.memory_space<vmem>>, vector<8x128xf32>,
    return
  }
  func.func @transform_0(%arg0: i32) -> (i32, i32) {
    %c0_i32 = arith.constant 0 : i32
    %c0_i32_0 = arith.constant 0 : i32
    return %c0_i32, %arg0 : i32, i32
  }
  func.func @transform_1(%arg0: i32) -> (i32, i32) {
    %c0_i32 = arith.constant 0 : i32
    %c0_i32_0 = arith.constant 0 : i32
    %c0_i32_1 = arith.constant 0 : i32
    return %c0_i32, %c0_i32_0 : i32, i32
  }
  func.func @transform_2(%arg0: i32) -> i32 {
    %c0_i32 = arith.constant 0 : i32
    %c0_i32_0 = arith.constant 0 : i32
    return %c0_i32 : i32
  }
  func.func @transform_3(%arg0: i32) -> (i32, i32) {
    %c0_i32 = arith.constant 0 : i32
    %c0_i32_0 = arith.constant 0 : i32
    %c0_i32_1 = arith.constant 0 : i32
    return %c0_i32, %c0_i32_0 : i32, i32
  }
  func.func @transform_4(%arg0: i32) -> i32 {
    %c0_i32 = arith.constant 0 : i32
    %c0_i32_0 = arith.constant 0 : i32
    return %c0_i32 : i32
  }
  func.func @transform_5(%arg0: i32) -> (i32, i32) {
    %c0_i32 = arith.constant 0 : i32
    %c0_i32_0 = arith.constant 0 : i32
    return %c0_i32, %arg0 : i32, i32
  }
}

</mosaic_0001>

<bundles_post_ra>
// kernel: linear_regression_model_forward.1
= control target key start
LH: loop header
LB: loop body
LE: loop exit
PB: predicated region body
PF: predicated region fallthrough
CT: control target
= control target key end

     0   :  { %s790_s0 = inlined_call_operand.vmem [shape: f32[32,256], index: 0, kind: input, shape index: {}]   ;;  %s791_s1 = inlined_call_operand.vmem [shape: f32[2,4], index: 1, kind: input, shape index: {}]   ;;  %s792_s2 = inlined_call_operand.vmem [shape: f32[2], index: 2, kind: input, shape index: {}]   ;;  %s793_s3 = inlined_call_operand.vmem [shape: f32[1,2], index: 3, kind: input, shape index: {}]   ;;  %s794_s4 = inlined_call_operand.<no memory space> [shape: f32[1], index: 4, kind: input, shape index: {}]   ;;  %s795_s5 = inlined_call_operand.vmem [shape: f32[8,256], index: 5, kind: output, shape index: {}]  }
   0x1   :  { %10 = sst [smem:[#allocation2]] %s794_s4 }
   0x2   :  { %11 = vsyncpa [#allocation5], 0 }
   0x3   :  { %12 = vsyncpa [#allocation7], 0  ;;  %s674_s20 = smov 0   ;;  %s676_s21 = smov 0  }
   0x4   :  { %s678_s22 = smov 0  }
   0x5 LB: > { %s690_s4 = sadd.s32 4294967295, %s636_s22   ;;  %s693_s23 = sadd.s32 1, %s636_s22   ;;  %s636_s22 = sphi %s678_s22, %s809_s22   ;;  %s632_s21 = sphi %s676_s21, %s808_s21   ;;  %s628_s20 = sphi %s674_s20, %s807_s20  }
   0x6   : > { %s22_s24 = ssub.s32 %s636_s22, %s693_s23  ;;  %s25_s25 = sadd.s32 1, %s632_s21 }
   0x7   : > { %p23_p0 = scmp.eq.s32.totalorder %s22_s24, 0  ;;  %p32_p1 = scmp.ne.s32.totalorder %s632_s21, %s628_s20 }
   0x8   : > { %p33_p2 = scmp.eq.s32.totalorder %s636_s22, 0  ;;  %p472_p3 = scmp.ge.s32.totalorder %s636_s22, 1 }
   0x9   : > { %s703_s26 = scalar_select %p23_p0, %s632_s21, %s25_s25  }
   0xa   : > { %p705_p4 = por %p33_p2, %p32_p1  ;;  %p159_p5 = scmp.lt.s32.totalorder %s636_s22, 3 }
   0xb   : > { %p796_p6 = scmp.eq.s32.totalorder %s690_s4, 0  ;;  %s183_s6 = sshll.u32 %s792_s2, 4  ;;  %s184_s6 = int_to_ptr.vmem [resolvable:$true] %s183_s6 }
   0xc   : > { %s798_s27 = scalar_select %p705_p4, 1, 0 }
   0xd   : > { %p711_p7 = pnand %p472_p3, %p159_p5  ;;  %s172_s9 = sshll.u32 %s791_s1, 4  ;;  %s173_s9 = int_to_ptr.vmem [resolvable:$true] %s172_s9 }
   0xe   : > { %s194_s13 = sshll.u32 %s793_s3, 4  ;;  %s561_s14 = scalar_lea.vmem %s184_s6, 16  ;;  %s732_s13 = int_to_ptr.vmem [resolvable:$true] %s194_s13 }
   0xf   : > { %s799_s28 = scalar_select %p711_p7, 1, 0 }
  0x10   : > { %p510_p8 = pneg %p711_p7  ;;  %p562_p10 = scmp.ne.s32.totalorder %s184_s6, %s561_s14 }
  0x11   : > { %p569_p0 = scmp.lt.s32.totalorder %s184_s6, %s184_s6  ;;  %p570_p1 = scmp.lt.s32.totalorder %s561_s14, %s561_s14 }
  0x12   : > { %p725_p9 = pnand %p796_p6, %p510_p8 }
  0x13   : > { %p571_p2 = por %p570_p1, %p569_p0 }
  0x14   : > { %p563_p11 = pneg %p725_p9 }
  0x16   : > { %p564_p12 = pnand %p563_p11, %p562_p10 }
  0x18   : > { %p565_p13 = pneg %p564_p12 }
  0x1a   : > { %p572_p3 = pnand %p571_p2, %p565_p13 }
  0x1c   : > { %575 = shalt.err (!%p572_p3)
}
  0x1d   : > { %s638_s15 = smov [#allocation6]   ;;  %s576_s16 = scalar_lea.vmem %s173_s9, 32 }
  0x1e   : > { %516 = dma.vmem_to_smem (!%p725_p9), %s184_s6, 16, %s638_s15, [#allocation7]  }
  0x1f   : > { %p577_p5 = scmp.ne.s32.totalorder %s173_s9, %s576_s16  ;;  %p584_p7 = scmp.lt.s32.totalorder %s173_s9, %s173_s9 }
  0x20   : > { %p585_p4 = scmp.lt.s32.totalorder %s576_s16, %s576_s16 }
  0x21   : > { %p579_p8 = pnand %p577_p5, %p563_p11 }
  0x22   : > { %p586_p10 = por %p585_p4, %p584_p7 }
  0x23   : > { %p580_p6 = pneg %p579_p8 }
  0x25   : > { %p587_p12 = pnand %p586_p10, %p580_p6 }
  0x27   : > { %590 = shalt.err (!%p587_p12)
}
  0x28   : > { %s639_s17 = smov [#allocation4]   ;;  %s591_s18 = scalar_lea.vmem %s732_s13, 16 }
  0x29   : > { %513 = dma.vmem_to_smem (!%p725_p9), %s173_s9, 32, %s639_s17, [#allocation5]  }
  0x2a   : > { %p592_p13 = scmp.ne.s32.totalorder %s732_s13, %s591_s18  ;;  %p599_p2 = scmp.lt.s32.totalorder %s732_s13, %s732_s13 }
  0x2b   : > { %p600_p3 = scmp.lt.s32.totalorder %s591_s18, %s591_s18 }
  0x2c   : > { %p594_p0 = pnand %p592_p13, %p563_p11 }
  0x2d   : > { %p601_p4 = por %p600_p3, %p599_p2 }
  0x2e   : > { %p595_p1 = pneg %p594_p0 }
  0x30   : > { %p602_p6 = pnand %p601_p4, %p595_p1 }
  0x32   : > { %605 = shalt.err (!%p602_p6)
}
  0x33   : > { %s640_s19 = smov [#allocation8]   ;;  %p476_p7 = scmp.ge.s32.totalorder %s636_s22, 2 }
  0x34   : > { %519 = dma.vmem_to_smem (!%p725_p9), %s732_s13, 16, %s640_s19, [#allocation7]  }
  0x35   : > { %204 = sbr.rel (%p476_p7) target bundleno = 67 (0x43), region = 32  ;;  %p801_p5 = scmp.ne.s32.totalorder (!%p476_p7), %s798_s27, 0 }
  0x3c   : > { %207 = sbr.rel (!%p801_p5) target bundleno = 67 (0x43), region = 36  ;;  %s209_s24 = sand.u32 (%p801_p5), 1, %s632_s21  }
  0x3d   : > { %s478_s25 = sshll.u32 (%p801_p5), %s636_s22, 3  ;;  %s477_s29 = sshll.u32 (%p801_p5), %s209_s24, 5 }
  0x3e   : > { %s213_s7 = scalar_lea.vmem (%p801_p5), %s790_s0, %s478_s25  ;;  %s211_s8 = scalar_lea.vmem (%p801_p5), [#allocation3], %s477_s29 }
  0x3f   : > { %v247_v0 = vld [vmem:[%s213_s7] sm:$0xff] (%p801_p5)  ;;  %v249_v1 = vld [vmem:[%s213_s7 + $0x10] sm:$0xff] (%p801_p5) }
  0x40   : > { %v251_v2 = vld [vmem:[%s213_s7 + $0x20] sm:$0xff] (%p801_p5)  ;;  %248 = vst [vmem:[%s211_s8] sm:$0xff] (%p801_p5), %v247_v0  ;;  %250 = vst [vmem:[%s211_s8 + $0x8] sm:$0xff] (%p801_p5), %v249_v1  ;;  %v253_v3 = vld [vmem:[%s213_s7 + $0x30] sm:$0xff] (%p801_p5) }
  0x41   : > { %252 = vst [vmem:[%s211_s8 + $0x10] sm:$0xff] (%p801_p5), %v251_v2  ;;  %254 = vst [vmem:[%s211_s8 + $0x18] sm:$0xff] (%p801_p5), %v253_v3 }
  0x43 PF: > { %p802_p9 = scmp.ne.s32.totalorder %s799_s28, 0 }
  0x44   : > { %s266_s22 = sand.u32 (!%p802_p9), 1, %s628_s20   ;;  %p803_p11 = scmp.eq.s32.totalorder (!%p802_p9), %s690_s4, 0 }
  0x45   : > { %263 = sbr.rel (%p802_p9) target bundleno = 144 (0x90), region = 74  ;;  %s480_s27 = sshll.u32 (!%p802_p9), %s266_s22, 5 }
  0x46   : > { %s268_s9 = scalar_lea.vmem (!%p802_p9), [#allocation3], %s480_s27 }
  0x4c   : > { %619 = dma.done.wait (%p803_p11), [#allocation5], 32   ;;  %p804_p8 = pmov %p803_p11 }
  0x4e   : > { %621 = vsyncadd (%p804_p8), [#allocation5], 4294967264  ;;  %p805_p10 = pmov %p804_p8 }
  0x4f   : > { %p806_p12 = pmov %p804_p8 }
  0x50   : > { %623 = dma.done.wait (%p805_p10), [#allocation7], 32  }
  0x51   : > { %625 = vsyncadd (%p806_p12), [#allocation7], 4294967264 }
  0x52   : > { %284 = sfence }
  0x53   : > { %s310_s10 = sld [smem:[#allocation4]]  ;;  %s486_s11 = sld [smem:[#allocation4 + $0x1]]  ;;  %v309_v4 = vld [vmem:[%s268_s9] sm:$0xff]  ;;  %v316_v5 = vld [vmem:[%s268_s9 + $0x8] sm:$0xff]  ;;  %v325_v10 = vld [vmem:[%s268_s9 + $0x10] sm:$0xff] }
  0x54   : > { %s485_s28 = sld [smem:[#allocation4 + $0x80]]  ;;  %s487_s12 = sld [smem:[#allocation4 + $0x81]]  ;;  %v334_v15 = vld [vmem:[%s268_s9 + $0x18] sm:$0xff] }
  0x55   : > { %s488_s13 = sld [smem:[#allocation4 + $0x2]]  ;;  %s490_s14 = sld [smem:[#allocation4 + $0x3]] }
  0x56   : > { %s489_s20 = sld [smem:[#allocation4 + $0x82]]  ;;  %s491_s15 = sld [smem:[#allocation4 + $0x83]] }
  0x57   : > { %s343_s16 = sld [smem:[#allocation6]]  ;;  %s492_s17 = sld [smem:[#allocation6 + $0x1]] }
  0x58   : > { %s369_s18 = sld [smem:[#allocation8]]  ;;  %s495_s19 = sld [smem:[#allocation8 + $0x1]] }
  0x59   : > { %v311_v6 = vstv %s310_s10  ;;  %v318_v9 = vstv %s486_s11  ;;  %p305_p13 = scmp.lt.s32.totalorder %s690_s4, 1  ;;  %s376_s24 = sld [smem:[#allocation2]] }
  0x5a   : > { %v312_v7 = vmul.f32 %v311_v6, %v309_v4  ;;  %v314_v8 = vstv %s485_s28  ;;  %v319_v12 = vmul.f32 %v318_v9, %v316_v5  ;;  %v322_v13 = vstv %s487_s12 }
  0x5b   : > { %v315_v11 = vmul.f32 %v314_v8, %v309_v4  ;;  %v327_v14 = vstv %s488_s13  ;;  %v323_v17 = vmul.f32 %v322_v13, %v316_v5  ;;  %v336_v21 = vstv %s490_s14  ;;  %s811_s4 = smov (!%p305_p13, %s690_s4), 1 }
  0x5c   : > { %v320_v16 = vadd.f32 %v319_v12, %v312_v7  ;;  %v328_v18 = vmul.f32 %v327_v14, %v325_v10  ;;  %v331_v19 = vstv %s489_s20  ;;  %v337_v24 = vmul.f32 %v336_v21, %v334_v15  ;;  %s484_s25 = sshll.u32 %s811_s4, 3 }
  0x5d   : > { %v332_v20 = vmul.f32 %v331_v19, %v325_v10  ;;  %v324_v22 = vadd.f32 %v323_v17, %v315_v11  ;;  %v340_v25 = vstv %s491_s15  ;;  %v344_v27 = vstv %s343_s16  ;;  %s308_s6 = scalar_lea.vmem %s795_s5, %s484_s25 }
  0x5e   : > { %v329_v23 = vadd.f32 %v328_v18, %v320_v16  ;;  %v341_v26 = vmul.f32 %v340_v25, %v334_v15  ;;  %v347_v30 = vstv %s492_s17  ;;  %v370_v51 = vstv %s369_s18 }
  0x5f   : > { %v333_v28 = vadd.f32 %v332_v20, %v324_v22  ;;  %v373_v54 = vstv %s495_s19  ;;  %v377_v58 = vstv %s376_s24 }
  0x60   : > { %v338_v29 = vadd.f32 %v337_v24, %v329_v23 }
  0x61   : > { %v342_v31 = vadd.f32 %v341_v26, %v333_v28 }
  0x62   : > { %v345_v32 = vadd.f32 %v344_v27, %v338_v29 }
  0x63   : > { %v348_v33 = vadd.f32 %v347_v30, %v342_v31 }
  0x64   : > { %v349_v34 = vmin.f32 %v345_v32, 20.0 }
  0x65   : > { %v359_v36 = vmin.f32 %v348_v33, 20.0 }
  0x66   : > { %v350_v35 = vmul.f32 1.442695, %v349_v34 }
  0x67   : > { %v360_v37 = vmul.f32 1.442695, %v359_v36 }
  0x68   : > { %553 = vpow2.f32 %v350_v35 }
  0x69   : > { %555 = vpow2.f32 %v360_v37 }
  0x72   : > { %v554_v38 = vpop.eup %553 }
  0x73   : > { %v352_v39 = vadd.f32 1.0, %v554_v38  ;;  %v556_v40 = vpop.eup %555 }
  0x74   : > { %v362_v42 = vadd.f32 1.0, %v556_v40 }
  0x75   : > { %v353_v41 = vmul.f32 %v352_v39, %v352_v39 }
  0x76   : > { %v363_v44 = vmul.f32 %v362_v42, %v362_v42 }
  0x77   : > { %v355_v43 = vadd.f32 1.0, %v353_v41  ;;  %v493_v46 = vadd.f32 -1.0, %v353_v41 }
  0x78   : > { %v365_v45 = vadd.f32 1.0, %v363_v44  ;;  %v494_v47 = vadd.f32 -1.0, %v363_v44 }
  0x79   : > { %557 = vrcp.f32 %v355_v43 }
  0x7a   : > { %559 = vrcp.f32 %v365_v45 }
  0x83   : > { %v558_v48 = vpop.eup %557 }
  0x84   : > { %v357_v49 = vmul.f32 %v558_v48, %v493_v46  ;;  %v560_v50 = vpop.eup %559 }
  0x85   : > { %v367_v53 = vmul.f32 %v560_v50, %v494_v47 }
  0x86   : > { %v358_v52 = vmul.f32 %v357_v49, %v345_v32 }
  0x87   : > { %v368_v55 = vmul.f32 %v367_v53, %v348_v33 }
  0x88   : > { %v371_v56 = vmul.f32 %v370_v51, %v358_v52 }
  0x89   : > { %v374_v57 = vmul.f32 %v373_v54, %v368_v55 }
  0x8b   : > { %v375_v59 = vadd.f32 %v374_v57, %v371_v56 }
  0x8d   : > { %v378_v60 = vadd.f32 %v377_v58, %v375_v59 }
  0x8f   : > { %379 = vst [vmem:[%s308_s6] sm:$0xff] %v378_v60 }
  0x90 PF: > { %p15_p0 = scmp.ge.s32.totalorder %s693_s23, 4   ;;  %s807_s20 = smov %s632_s21 }
  0x91   : > { %s808_s21 = smov %s703_s26  ;;  %s809_s22 = smov %s693_s23 }
  0x92   :  { %17 = sbr.rel (!%p15_p0) target bundleno = 5 (0x5), region = 126 }
  0x99   :  { %399 = vsyncpa [#allocation5], 1 }
  0x9a   :  { %401 = vsyncpa [#allocation5 + $0x1], 1 }
  0x9b   :  { %402 = vsyncpa [#allocation7], 1 }

</bundles_post_ra>
